<compile_context>
chip_gen: v6e
topology: v6e:2x2x1
jax: 0.10.0
libtpu: 0.0.40
codegen_flags: <defaults>
</compile_context>

<pallas_src>
import functools

import jax
import jax.numpy as jnp
from jax.experimental import pallas as pl
from jax.experimental.pallas import tpu as pltpu


def _pick_tile(dim, cap, align):
    """Largest tile <= cap that is a multiple of `align` and divides `dim`.

    Falls back to the full (un-tiled) dimension when no such tile exists.
    # TODO(synk): pad ragged dims instead of falling back to a full block.
    """
    if dim <= cap:
        return dim
    t = (cap // align) * align
    while t >= align:
        if dim % t == 0:
            return t
        t -= align
    return dim


# --------------------------------------------------------------------------
# Cross-entropy (mean) kernel: grid = (batch tiles, class tiles)
# --------------------------------------------------------------------------
def _ce_kernel(logits_ref, tgt_ref, ce_ref, m_ref, l_ref, tl_ref, *, inv_n):
    bi = pl.program_id(0)
    bc = pl.program_id(1)
    n_c = pl.num_programs(1)

    @pl.when((bi == 0) & (bc == 0))
    def _init_out():
        ce_ref[...] = jnp.zeros_like(ce_ref)

    @pl.when(bc == 0)
    def _init_row_state():
        m_ref[...] = jnp.full_like(m_ref, -jnp.inf)
        l_ref[...] = jnp.zeros_like(l_ref)
        tl_ref[...] = jnp.zeros_like(tl_ref)

    logits = logits_ref[...].astype(jnp.float32)           # (TN, TC)
    tn, tc = logits.shape

    # One-hot against the *global* class offset of this tile.
    col = jax.lax.broadcasted_iota(jnp.int32, (tn, tc), 1) + bc * tc
    hit = col == tgt_ref[...]                               # (TN, TC) bool
    tl_ref[...] += jnp.sum(jnp.where(hit, logits, 0.0), axis=-1, keepdims=True)

    # Online logsumexp across class tiles (flash-softmax style).
    m_prev = m_ref[...]
    m_new = jnp.maximum(m_prev, jnp.max(logits, axis=-1, keepdims=True))
    l_ref[...] = (l_ref[...] * jnp.exp(m_prev - m_new)
                  + jnp.sum(jnp.exp(logits - m_new), axis=-1, keepdims=True))
    m_ref[...] = m_new

    @pl.when(bc == n_c - 1)
    def _finalize_rows():
        per_row = m_ref[...] + jnp.log(l_ref[...]) - tl_ref[...]   # (TN, 1)
        ce_ref[...] += jnp.sum(per_row) * inv_n


# --------------------------------------------------------------------------
# KL kernel: grid = (OUT tiles, IN tiles); fuses the final scalar combination
# --------------------------------------------------------------------------
def _kl_kernel(ce_ref, scale_ref, w_ref, ls_ref, loss_ref):
    bo = pl.program_id(0)
    bi = pl.program_id(1)
    n_o = pl.num_programs(0)
    n_i = pl.num_programs(1)

    @pl.when((bo == 0) & (bi == 0))
    def _init():
        loss_ref[...] = jnp.zeros_like(loss_ref)

    # TODO(synk): network.kl() depends on the wrapped network; this is the
    # standard LinearSVDO (Molchanov et al.) KL approximation.
    w = w_ref[...].astype(jnp.float32)
    ls = ls_ref[...].astype(jnp.float32)
    log_alpha = jnp.clip(2.0 * ls - jnp.log(w * w + 1e-8), -10.0, 10.0)

    k1, k2, k3 = 0.63576, 1.8732, 1.48695
    # sigmoid via a single EUP tanh (no exp + divide on the VALU).
    sig = 0.5 * (jnp.tanh(0.5 * (k2 + k3 * log_alpha)) + 1.0)
    neg_kl = k1 * sig - 0.5 * jnp.log1p(jnp.exp(-log_alpha)) - k1
    loss_ref[...] += -jnp.sum(neg_kl)                       # accumulate raw KL

    @pl.when((bo == n_o - 1) & (bi == n_i - 1))
    def _finalize():
        # loss = ce + (kl_weight / dataset_size) * kl, fused in-kernel.
        loss_ref[...] = ce_ref[0, 0] + scale_ref[0] * loss_ref[...]


# --------------------------------------------------------------------------
# Wrapper
# --------------------------------------------------------------------------
def sgvlb_loss(logits, targets, weight, log_sigma, dataset_size, kl_weight=1.0,
               *, tile_n=256, tile_c=512, tile_o=256, tile_i=512):
    n, c = logits.shape
    o, i_dim = weight.shape

    sub_align_l = 8 * (4 // jnp.dtype(logits.dtype).itemsize)
    sub_align_w = 8 * (4 // jnp.dtype(weight.dtype).itemsize)
    tn = _pick_tile(n, tile_n, sub_align_l)
    tc = _pick_tile(c, tile_c, 128)
    to = _pick_tile(o, tile_o, sub_align_w)
    ti = _pick_tile(i_dim, tile_i, 128)

    tgt2d = targets.astype(jnp.int32).reshape(n, 1)

    # ---- cross entropy (mean over batch) --------------------------------
    ce = pl.pallas_call(
        functools.partial(_ce_kernel, inv_n=1.0 / n),
        out_shape=jax.ShapeDtypeStruct((1, 1), jnp.float32),
        grid=(n // tn, c // tc),
        in_specs=[
            pl.BlockSpec((tn, tc), lambda bi, bc: (bi, bc)),
            pl.BlockSpec((tn, 1), lambda bi, bc: (bi, 0)),
        ],
        out_specs=pl.BlockSpec((1, 1), lambda bi, bc: (0, 0)),
        scratch_shapes=[
            pltpu.VMEM((tn, 1), jnp.float32),   # running max m
            pltpu.VMEM((tn, 1), jnp.float32),   # running sum-exp l
            pltpu.VMEM((tn, 1), jnp.float32),   # target logit accumulator
        ],
        compiler_params=pltpu.CompilerParams(
            dimension_semantics=("arbitrary", "arbitrary")),
        cost_estimate=pl.CostEstimate(
            flops=5 * n * c,
            transcendentals=n * c,
            bytes_accessed=int(logits.size) * logits.dtype.itemsize + n * 4 + 4),
    )(logits, tgt2d)

    # ---- KL of the sparse-VD layer + fused final combination ------------
    scale = jnp.asarray(kl_weight / dataset_size, dtype=jnp.float32).reshape(1)

    loss = pl.pallas_call(
        _kl_kernel,
        out_shape=jax.ShapeDtypeStruct((1, 1), jnp.float32),
        grid=(o // to, i_dim // ti),
        in_specs=[
            pl.BlockSpec(memory_space=pltpu.MemorySpace.SMEM),   # ce (1,1)
            pl.BlockSpec(memory_space=pltpu.MemorySpace.SMEM),   # scale (1,)
            pl.BlockSpec((to, ti), lambda bo, bi: (bo, bi)),     # weight
            pl.BlockSpec((to, ti), lambda bo, bi: (bo, bi)),     # log_sigma
        ],
        out_specs=pl.BlockSpec((1, 1), lambda bo, bi: (0, 0)),
        compiler_params=pltpu.CompilerParams(
            dimension_semantics=("arbitrary", "arbitrary")),
        cost_estimate=pl.CostEstimate(
            flops=15 * o * i_dim,
            transcendentals=4 * o * i_dim,
            bytes_accessed=2 * int(weight.size) * weight.dtype.itemsize + 12),
    )(ce, scale, weight, log_sigma)

    return loss[0, 0]


# --------------------------------------------------------------------------
# Pure-JAX reference (matches the PyTorch forward)
# --------------------------------------------------------------------------
def _reference(logits, targets, weight, log_sigma, dataset_size, kl_weight=1.0):
    logits = logits.astype(jnp.float32)
    logp = jax.nn.log_softmax(logits, axis=-1)
    ce = -jnp.mean(jnp.take_along_axis(
        logp, targets[:, None].astype(jnp.int32), axis=-1))
    log_alpha = jnp.clip(2.0 * log_sigma - jnp.log(weight * weight + 1e-8),
                         -10.0, 10.0)
    k1, k2, k3 = 0.63576, 1.8732, 1.48695
    neg_kl = (k1 * jax.nn.sigmoid(k2 + k3 * log_alpha)
              - 0.5 * jnp.log1p(jnp.exp(-log_alpha)) - k1)
    kl = -jnp.sum(neg_kl)
    return ce + kl_weight * kl / dataset_size


if __name__ == "__main__":
    key = jax.random.PRNGKey(0)
    k_logit, k_tgt, k_w, k_ls = jax.random.split(key, 4)

    N, C = 64, 256        # batch, num classes
    OUT, IN = 64, 256     # synthetic sparse-variational-dropout layer

    logits = jax.random.normal(k_logit, (N, C), dtype=jnp.float32)
    targets = jax.random.randint(k_tgt, (N,), 0, C, dtype=jnp.int32)
    weight = 0.1 * jax.random.normal(k_w, (OUT, IN), dtype=jnp.float32)
    log_sigma = -5.0 + 0.01 * jax.random.normal(k_ls, (OUT, IN), dtype=jnp.float32)

    dataset_size = 60000.0
    kl_weight = 1.0

    # Small tile caps so the demo exercises the 2-D grids + online logsumexp.
    loss = sgvlb_loss(logits, targets, weight, log_sigma, dataset_size, kl_weight,
                      tile_n=32, tile_c=128, tile_o=32, tile_i=128)
    loss = jax.block_until_ready(loss)

    ref = _reference(logits, targets, weight, log_sigma, dataset_size, kl_weight)
    assert jnp.allclose(loss, ref, rtol=1e-4, atol=1e-4), (loss, ref)

    print("KERNEL_OK")
</pallas_src>

<mosaic_0001>
module attributes {stable_mosaic.version = 11 : i64} {
  func.func @_ce_kernel(%arg0: i32, %arg1: i32, %arg2: memref<32x128xf32, #tpu.memory_space<vmem>>, %arg3: memref<32x1xi32, #tpu.memory_space<vmem>>, %arg4: memref<1x1xf32, #tpu.memory_space<vmem>>, %arg5: memref<32x1xf32, #tpu.memory_space<vmem>>, %arg6: memref<32x1xf32, #tpu.memory_space<vmem>>, %arg7: memref<32x1xf32, #tpu.memory_space<vmem>>) attributes {dimension_semantics = [#tpu.dimension_semantics<arbitrary>, #tpu.dimension_semantics<arbitrary>], iteration_bounds = array<i64: 2, 2>, scalar_prefetch = 0 : i64, scratch_operands = 3 : i64, tpu.core_type = #tpu.core_type<tc>, window_params = [{transform_indices = @transform_0, window_bounds = array<i64: 32, 128>}, {transform_indices = @transform_1, window_bounds = array<i64: 32, 1>}, {pipeline_mode = #tpu.pipeline_mode<synchronous>, transform_indices = @transform_2, window_bounds = array<i64: 1, 1>}]} {
    %c0_i32 = arith.constant 0 : i32
    %0 = arith.cmpi eq, %arg0, %c0_i32 : i32
    %c0_i32_0 = arith.constant 0 : i32
    %1 = arith.cmpi eq, %arg1, %c0_i32_0 : i32
    %2 = arith.andi %0, %1 : i1
    %3 = arith.extui %2 : i1 to i32
    %c0_i32_1 = arith.constant 0 : i32
    %4 = arith.cmpi ne, %3, %c0_i32_1 : i32
    scf.if %4 {
      %cst_23 = arith.constant 0.000000e+00 : f32
      %42 = vector.broadcast %cst_23 : f32 to vector<1x1xf32>
      %c0_24 = arith.constant 0 : index
      %c0_25 = arith.constant 0 : index
      %43 = vector.load %arg4[%c0_24, %c0_25] : memref<1x1xf32, #tpu.memory_space<vmem>>, vector<1x1xf32>
      tpu.vector_store %arg4[%c0_24, %c0_25], %42 {strides = array<i32>} : memref<1x1xf32, #tpu.memory_space<vmem>>, vector<1x1xf32>,
    } else {
    }
    %c0_i32_2 = arith.constant 0 : i32
    %5 = arith.cmpi eq, %arg1, %c0_i32_2 : i32
    %6 = arith.extui %5 : i1 to i32
    %c0_i32_3 = arith.constant 0 : i32
    %7 = arith.cmpi ne, %6, %c0_i32_3 : i32
    scf.if %7 {
      %cst_23 = arith.constant 0xFF800000 : f32
      %42 = vector.broadcast %cst_23 : f32 to vector<32x1xf32>
      %c0_24 = arith.constant 0 : index
      %c0_25 = arith.constant 0 : index
      %43 = vector.load %arg5[%c0_24, %c0_25] : memref<32x1xf32, #tpu.memory_space<vmem>>, vector<32x1xf32>
      tpu.vector_store %arg5[%c0_24, %c0_25], %42 {strides = array<i32>} : memref<32x1xf32, #tpu.memory_space<vmem>>, vector<32x1xf32>,
      %cst_26 = arith.constant 0.000000e+00 : f32
      %44 = vector.broadcast %cst_26 : f32 to vector<32x1xf32>
      %c0_27 = arith.constant 0 : index
      %c0_28 = arith.constant 0 : index
      %45 = vector.load %arg6[%c0_27, %c0_28] : memref<32x1xf32, #tpu.memory_space<vmem>>, vector<32x1xf32>
      tpu.vector_store %arg6[%c0_27, %c0_28], %44 {strides = array<i32>} : memref<32x1xf32, #tpu.memory_space<vmem>>, vector<32x1xf32>,
      %cst_29 = arith.constant 0.000000e+00 : f32
      %46 = vector.broadcast %cst_29 : f32 to vector<32x1xf32>
      %c0_30 = arith.constant 0 : index
      %c0_31 = arith.constant 0 : index
      %47 = vector.load %arg7[%c0_30, %c0_31] : memref<32x1xf32, #tpu.memory_space<vmem>>, vector<32x1xf32>
      tpu.vector_store %arg7[%c0_30, %c0_31], %46 {strides = array<i32>} : memref<32x1xf32, #tpu.memory_space<vmem>>, vector<32x1xf32>,
    } else {
    }
    %c0 = arith.constant 0 : index
    %c0_4 = arith.constant 0 : index
    %8 = vector.load %arg2[%c0, %c0_4] : memref<32x128xf32, #tpu.memory_space<vmem>>, vector<32x128xf32>
    %9 = tpu.iota {dimensions = array<i32: 1>} : vector<32x128xi32>
    %c128_i32 = arith.constant 128 : i32
    %10 = arith.muli %arg1, %c128_i32 : i32
    %11 = vector.broadcast %10 : i32 to vector<32x128xi32>
    %12 = arith.addi %9, %11 : vector<32x128xi32>
    %c0_5 = arith.constant 0 : index
    %c0_6 = arith.constant 0 : index
    %13 = vector.load %arg3[%c0_5, %c0_6] : memref<32x1xi32, #tpu.memory_space<vmem>>, vector<32x1xi32>
    %14 = vector.broadcast %13 : vector<32x1xi32> to vector<32x128xi32>
    %15 = arith.cmpi eq, %12, %14 : vector<32x128xi32>
    %c0_7 = arith.constant 0 : index
    %c0_8 = arith.constant 0 : index
    %16 = vector.load %arg7[%c0_7, %c0_8] : memref<32x1xf32, #tpu.memory_space<vmem>>, vector<32x1xf32>
    %cst = arith.constant 0.000000e+00 : f32
    %17 = vector.broadcast %cst : f32 to vector<32x128xf32>
    %18 = arith.select %15, %8, %17 : vector<32x128xi1>, vector<32x128xf32>
    %cst_9 = arith.constant dense<0.000000e+00> : vector<32xf32>
    %19 = vector.multi_reduction <add>, %18, %cst_9 [1] : vector<32x128xf32> to vector<32xf32>
    %20 = vector.shape_cast %19 : vector<32xf32> to vector<32x1xf32>
    %21 = arith.addf %16, %20 : vector<32x1xf32>
    %c0_10 = arith.constant 0 : index
    %c0_11 = arith.constant 0 : index
    %22 = vector.load %arg7[%c0_10, %c0_11] : memref<32x1xf32, #tpu.memory_space<vmem>>, vector<32x1xf32>
    tpu.vector_store %arg7[%c0_10, %c0_11], %21 {strides = array<i32>} : memref<32x1xf32, #tpu.memory_space<vmem>>, vector<32x1xf32>,
    %c0_12 = arith.constant 0 : index
    %c0_13 = arith.constant 0 : index
    %23 = vector.load %arg5[%c0_12, %c0_13] : memref<32x1xf32, #tpu.memory_space<vmem>>, vector<32x1xf32>
    %cst_14 = arith.constant dense<0xFF800000> : vector<32xf32>
    %24 = vector.multi_reduction <maximumf>, %8, %cst_14 [1] : vector<32x128xf32> to vector<32xf32>
    %25 = vector.shape_cast %24 : vector<32xf32> to vector<32x1xf32>
    %26 = arith.maximumf %23, %25 : vector<32x1xf32>
    %c0_15 = arith.constant 0 : index
    %c0_16 = arith.constant 0 : index
    %27 = vector.load %arg6[%c0_15, %c0_16] : memref<32x1xf32, #tpu.memory_space<vmem>>, vector<32x1xf32>
    %28 = arith.subf %23, %26 : vector<32x1xf32>
    %29 = math.exp %28 : vector<32x1xf32>
    %30 = arith.mulf %27, %29 : vector<32x1xf32>
    %31 = vector.broadcast %26 : vector<32x1xf32> to vector<32x128xf32>
    %32 = arith.subf %8, %31 : vector<32x128xf32>
    %33 = math.exp %32 : vector<32x128xf32>
    %cst_17 = arith.constant dense<0.000000e+00> : vector<32xf32>
    %34 = vector.multi_reduction <add>, %33, %cst_17 [1] : vector<32x128xf32> to vector<32xf32>
    %35 = vector.shape_cast %34 : vector<32xf32> to vector<32x1xf32>
    %36 = arith.addf %30, %35 : vector<32x1xf32>
    %c0_18 = arith.constant 0 : index
    %c0_19 = arith.constant 0 : index
    %37 = vector.load %arg6[%c0_18, %c0_19] : memref<32x1xf32, #tpu.memory_space<vmem>>, vector<32x1xf32>
    tpu.vector_store %arg6[%c0_18, %c0_19], %36 {strides = array<i32>} : memref<32x1xf32, #tpu.memory_space<vmem>>, vector<32x1xf32>,
    %c0_20 = arith.constant 0 : index
    %c0_21 = arith.constant 0 : index
    %38 = vector.load %arg5[%c0_20, %c0_21] : memref<32x1xf32, #tpu.memory_space<vmem>>, vector<32x1xf32>
    tpu.vector_store %arg5[%c0_20, %c0_21], %26 {strides = array<i32>} : memref<32x1xf32, #tpu.memory_space<vmem>>, vector<32x1xf32>,
    %c1_i32 = arith.constant 1 : i32
    %39 = arith.cmpi eq, %arg1, %c1_i32 : i32
    %40 = arith.extui %39 : i1 to i32
    %c0_i32_22 = arith.constant 0 : i32
    %41 = arith.cmpi ne, %40, %c0_i32_22 : i32
    scf.if %41 {
      %c0_23 = arith.constant 0 : index
      %c0_24 = arith.constant 0 : index
      %42 = vector.load %arg5[%c0_23, %c0_24] : memref<32x1xf32, #tpu.memory_space<vmem>>, vector<32x1xf32>
      %c0_25 = arith.constant 0 : index
      %c0_26 = arith.constant 0 : index
      %43 = vector.load %arg6[%c0_25, %c0_26] : memref<32x1xf32, #tpu.memory_space<vmem>>, vector<32x1xf32>
      %44 = math.log %43 : vector<32x1xf32>
      %45 = arith.addf %42, %44 : vector<32x1xf32>
      %c0_27 = arith.constant 0 : index
      %c0_28 = arith.constant 0 : index
      %46 = vector.load %arg7[%c0_27, %c0_28] : memref<32x1xf32, #tpu.memory_space<vmem>>, vector<32x1xf32>
      %47 = arith.subf %45, %46 : vector<32x1xf32>
      %c0_29 = arith.constant 0 : index
      %c0_30 = arith.constant 0 : index
      %48 = vector.load %arg4[%c0_29, %c0_30] : memref<1x1xf32, #tpu.memory_space<vmem>>, vector<1x1xf32>
      %49 = vector.shape_cast %47 : vector<32x1xf32> to vector<1x32x1xf32>
      %cst_31 = arith.constant dense<0.000000e+00> : vector<1xf32>
      %50 = vector.multi_reduction <add>, %49, %cst_31 [1, 2] : vector<1x32x1xf32> to vector<1xf32>
      %51 = vector.shape_cast %50 : vector<1xf32> to vector<1x1x1xf32>
      %52 = vector.extract %51[0, 0, 0] : f32 from vector<1x1x1xf32>
      %cst_32 = arith.constant 1.562500e-02 : f32
      %53 = arith.mulf %52, %cst_32 : f32
      %54 = vector.broadcast %53 : f32 to vector<1x1xf32>
      %55 = arith.addf %48, %54 : vector<1x1xf32>
      %c0_33 = arith.constant 0 : index
      %c0_34 = arith.constant 0 : index
      %56 = vector.load %arg4[%c0_33, %c0_34] : memref<1x1xf32, #tpu.memory_space<vmem>>, vector<1x1xf32>
      tpu.vector_store %arg4[%c0_33, %c0_34], %55 {strides = array<i32>} : memref<1x1xf32, #tpu.memory_space<vmem>>, vector<1x1xf32>,
    } else {
    }
    return
  }
  func.func @transform_0(%arg0: i32, %arg1: i32) -> (i32, i32) {
    %c0_i32 = arith.constant 0 : i32
    return %arg0, %arg1 : i32, i32
  }
  func.func @transform_1(%arg0: i32, %arg1: i32) -> (i32, i32) {
    %c0_i32 = arith.constant 0 : i32
    %c0_i32_0 = arith.constant 0 : i32
    return %arg0, %c0_i32 : i32, i32
  }
  func.func @transform_2(%arg0: i32, %arg1: i32) -> (i32, i32) {
    %c0_i32 = arith.constant 0 : i32
    %c0_i32_0 = arith.constant 0 : i32
    %c0_i32_1 = arith.constant 0 : i32
    return %c0_i32, %c0_i32_0 : i32, i32
  }
}

</mosaic_0001>

<bundles_post_ra>
// kernel: tpu_custom_call.1
= control target key start
LH: loop header
LB: loop body
LE: loop exit
PB: predicated region body
PF: predicated region fallthrough
CT: control target
= control target key end

     0   :  { %7 = vsyncpa [#allocation6], 0  ;;  %s1011_s0 = inlined_call_operand.hbm [shape: f32[64,256], index: 0, kind: input, shape index: {}]   ;;  %s1012_s1 = inlined_call_operand.vmem [shape: s32[64,1], index: 1, kind: input, shape index: {}]   ;;  %s1013_s2 = inlined_call_operand.hbm [shape: f32[1,1], index: 2, kind: output, shape index: {}]  }
   0x1   :  { %9 = vsyncpa [#allocation6 + $0x1], 0 }
   0x2   :  { %10 = vsyncpa [#allocation7], 0  ;;  %s772_s9 = smov 0   ;;  %s774_s10 = smov 0  }
   0x3   :  { %s776_s11 = smov 0   ;;  %s778_s12 = smov 0  }
   0x4   :  { %s780_s13 = smov 0   ;;  %s782_s14 = smov 0  }
   0x5   :  { %s784_s15 = smov 0   ;;  %s786_s16 = smov 0  }
   0x6 LB: > { %s492_s17 = sadd.s32 4294967295, %s746_s16   ;;  %s25_s18 = sadd.s32 1, %s738_s14  ;;  %s746_s16 = sphi %s786_s16, %s16_s16   ;;  %s742_s15 = sphi %s784_s15, %s1024_s15   ;;  %s738_s14 = sphi %s782_s14, %s1023_s14   ;;  %s734_s13 = sphi %s780_s13, %s1022_s13   ;;  %s730_s12 = sphi %s778_s12, %s1021_s12   ;;  %s726_s11 = sphi %s776_s11, %s1020_s11   ;;  %s722_s10 = sphi %s774_s10, %s1019_s10   ;;  %s718_s9 = sphi %s772_s9, %s1018_s9  }
   0x7   : > { %p26_p0 = scmp.ge.s32.totalorder %s25_s18, 2  ;;  %s28_s19 = sadd.s32 1, %s742_s15 }
   0x8   : > { %s37_s20 = sadd.s32 1, %s726_s11  ;;  %p44_p1 = scmp.ne.s32.totalorder %s726_s11, %s722_s10 }
   0x9   : > { %s1026_s18 = smov (%p26_p0, %s25_s18), 0  ;;  %s1028_s19 = smov (!%p26_p0, %s28_s19), %s742_s15 }
   0xa   : > { %s33_s21 = ssub.s32 %s738_s14, %s1026_s18  ;;  %p45_p2 = scmp.eq.s32.totalorder %s746_s16, 0 }
   0xb   : > { %p30_p3 = scmp.ge.s32.totalorder %s1028_s19, 2  ;;  %p50_p4 = scmp.ne.s32.totalorder %s722_s10, %s718_s9 }
   0xc   : > { %p823_p5 = por %p45_p2, %p44_p1  ;;  %p51_p6 = scmp.eq.s32.totalorder %s492_s17, 0 }
   0xd   : > { %s1030_s19 = smov (%p30_p3, %s1028_s19), 0  ;;  %p523_p8 = scmp.lt.s32.totalorder %s746_s16, 4 }
   0xe   : > { %p831_p7 = por %p51_p6, %p50_p4  ;;  %s32_s24 = ssub.s32 %s742_s15, %s1030_s19 }
   0xf   : > { %s34_s25 = sor.u32 %s33_s21, %s32_s24  ;;  %s121_s26 = sand.u32 1, %s726_s11  }
  0x10   : > { %p35_p9 = scmp.eq.s32.totalorder %s34_s25, 0  ;;  %s495_s27 = sshll.u32 %s121_s26, 5 }
  0x11   : > { %s510_s28 = sshll.u32 %s742_s15, 3  ;;  %s125_s4 = scalar_lea.vmem [#allocation5], %s495_s27 }
  0x12   : > { %s841_s29 = scalar_select %p35_p9, %s726_s11, %s37_s20  }
  0x13   : > { %s131_s30 = sadd.s32 %s738_s14, %s510_s28  ;;  %s134_s5 = sshll.u32 %s125_s4, 4  ;;  %s135_s5 = int_to_ptr.vmem [resolvable:$true] %s134_s5 }
  0x14   : > { %s498_s3 = sshll.u32 %s131_s30, 7  ;;  %p851_p10 = pnand %p523_p8, %p823_p5 }
  0x15   : > { %s133_s8 = scalar_lea.hbm %s1011_s0, %s498_s3  ;;  %p499_p11 = scmp.ge.s32.totalorder %s746_s16, 1 }
  0x16   : > { %s122_s21 = scalar_lea.sflag [#allocation6], %s121_s26  ;;  %p626_p12 = pneg %p851_p10 }
  0x17   : > { %s637_s20 = scalar_lea.vmem %s135_s5, 512  ;;  %s748_s24 = smov [#allocation5]  }
  0x18   : > { %p638_p13 = scmp.ne.s32.totalorder %s135_s5, %s637_s20  ;;  %s642_s25 = sshll.u32 %s748_s24, 4  ;;  %s643_s25 = int_to_ptr.vmem [resolvable:$false] %s642_s25 }
  0x19   : > { %s644_s27 = scalar_lea.vmem %s643_s25, 1024  ;;  %p645_p2 = scmp.lt.s32.totalorder %s135_s5, %s643_s25 }
  0x1a   : > { %p640_p0 = pnand %p638_p13, %p626_p12  ;;  %p646_p3 = scmp.lt.s32.totalorder %s644_s27, %s637_s20 }
  0x1c   : > { %p641_p1 = pneg %p640_p0  ;;  %p647_p4 = por %p646_p3, %p645_p2 }
  0x1e   : > { %p648_p5 = pnand %p647_p4, %p641_p1 }
  0x20   : > { %651 = shalt.err (!%p648_p5)
}
  0x21   : > { %s749_s22 = smov 256   ;;  %s750_s26 = smov 128  }
  0x22   : > { %s751_s28 = smov 8   ;;  %p151_p6 = scmp.lt.s32.totalorder %s746_s16, 5 }
  0x23   : > { %522 = dma.hbm_to_vmem [thread:$0]  (!%p851_p10), %s133_s8, 512, %s135_s5, %s122_s21, %s749_s22, %s750_s26, %s751_s28  }
  0x24   : > { %p152_p8 = pnand %p499_p11, %p151_p6 }
  0x25   : > { %s157_s30 = sand.u32 (!%p152_p8), 1, %s722_s10  }
  0x26   : > { %155 = sbr.rel (%p152_p8) target bundleno = 765 (0x2fd), region = 28  ;;  %s500_s3 = sshll.u32 (!%p152_p8), %s157_s30, 5 }
  0x27   : > { %s158_s4 = scalar_lea.sflag (!%p152_p8), [#allocation6], %s157_s30  ;;  %s864_s6 = scalar_lea.vmem (!%p152_p8), [#allocation5], %s500_s3 }
  0x2b   : > { %709 = dma.done.wait (%p831_p7), %s158_s4, 512  }
  0x2c   : > { %711 = vsyncadd (%p831_p7), %s158_s4, 4294966784  ;;  %s501_s5 = sshll.u32 %s734_s13, 2  ;;  %p189_p9 = scmp.eq.s32.totalorder %s734_s13, 0 }
  0x2d   : > { %p184_p10 = scmp.lt.s32.totalorder %s501_s5, 7  ;;  %p190_p11 = scmp.eq.s32.totalorder %s730_s12, 0 }
  0x2f   : > { %s1032_s5 = smov (!%p184_p10, %s501_s5), 7  ;;  %p191_p12 = pnand %p190_p11, %p189_p9 }
  0x30   : > { %s502_s7 = sshll.u32 %s1032_s5, 3 }
  0x31   : > { %s876_s21 = scalar_lea.vmem %s1012_s1, %s502_s7  ;;  %194 = sbr.rel (%p191_p12) target bundleno = 56 (0x38), region = 36 }
  0x36   : > { %vm195_vm0 = vcmask 0   ;;  %v752_v0 = vmov 0.0  }
  0x37   : > { %196 = vst.msk [vmem:[#allocation8] sm:$0x1] %vm195_vm0, %v752_v0 }
  0x38 PF: > { %p503_p7 = scmp.ne.s32.totalorder %s730_s12, 0 }
  0x3a   : > { %199 = sbr.rel (%p503_p7) target bundleno = 70 (0x46), region = 40 }
  0x3f   : > { %vm200_vm1 = vcmask 7168   ;;  %v753_v1 = vmov -inf   ;;  %v754_v2 = vmov 0.0  }
  0x40   : > { %201 = vst.msk [vmem:[#allocation2] sm:$0xff] %vm200_vm1, %v753_v1  ;;  %202 = vst.msk [vmem:[#allocation2 + $0x8] sm:$0xff] %vm200_vm1, %v753_v1 }
  0x41   : > { %203 = vst.msk [vmem:[#allocation2 + $0x10] sm:$0xff] %vm200_vm1, %v753_v1  ;;  %204 = vst.msk [vmem:[#allocation2 + $0x18] sm:$0xff] %vm200_vm1, %v753_v1 }
  0x42   : > { %205 = vst.msk [vmem:[#allocation3] sm:$0xff] %vm200_vm1, %v754_v2  ;;  %206 = vst.msk [vmem:[#allocation3 + $0x8] sm:$0xff] %vm200_vm1, %v754_v2 }
  0x43   : > { %207 = vst.msk [vmem:[#allocation3 + $0x10] sm:$0xff] %vm200_vm1, %v754_v2  ;;  %208 = vst.msk [vmem:[#allocation3 + $0x18] sm:$0xff] %vm200_vm1, %v754_v2 }
  0x44   : > { %209 = vst.msk [vmem:[#allocation4] sm:$0xff] %vm200_vm1, %v754_v2  ;;  %210 = vst.msk [vmem:[#allocation4 + $0x8] sm:$0xff] %vm200_vm1, %v754_v2 }
  0x45   : > { %211 = vst.msk [vmem:[#allocation4 + $0x10] sm:$0xff] %vm200_vm1, %v754_v2  ;;  %212 = vst.msk [vmem:[#allocation4 + $0x18] sm:$0xff] %vm200_vm1, %v754_v2 }
  0x46 PF: > { %v880_v3 = vld [vmem:[%s864_s6] sm:$0xff]  ;;  %v883_v4 = vld [vmem:[%s864_s6 + $0x10] sm:$0xff]  ;;  %v888_v5 = vld [vmem:[%s864_s6 + $0x8] sm:$0xff]  ;;  %v755_v7 = vmov 0   ;;  %vm262_vm2 = vcmask 7168   ;;  %v217_v29 = vlaneseq  ;;  %s504_s13 = sshll.u32 %s730_s12, 7 }
  0x47   : > { %271 = vmax.xlane.f32.xlu0 %v880_v3  ;;  %275 = vmax.xlane.f32.xlu1 %v883_v4  ;;  %v891_v6 = vld [vmem:[%s864_s6 + $0x18] sm:$0xff]  ;;  %v895_v8 = vld [vmem:[#allocation2] sm:$0xff]  ;;  %v905_v14 = vld [vmem:[#allocation2 + $0x8] sm:$0xff]  ;;  %v220_v34 = vstv %s504_s13  ;;  %p505_p13 = scmp.ne.s32.totalorder %s730_s12, 1 }
  0x48   : > { %598 = vset.pattern.permute.xlu0 %v755_v7  ;;  %599 = vset.pattern.permute.xlu1 %v755_v7  ;;  %v897_v9 = vld [vmem:[#allocation2 + $0x10] sm:$0xff]  ;;  %v907_v15 = vld [vmem:[#allocation2 + $0x18] sm:$0xff]  ;;  %v222_v24 = vld [vmem:[%s876_s21] sm:$0xff]  ;;  %v218_v33 = vand.u32 127, %v217_v29 }
  0x49   : > { %v223_v25 = vld [vmem:[%s876_s21 + $0x8] sm:$0xff]  ;;  %v224_v26 = vld [vmem:[%s876_s21 + $0x10] sm:$0xff]  ;;  %v225_v27 = vld [vmem:[%s876_s21 + $0x18] sm:$0xff] }
  0x4a   : > { %v221_v39 = vadd.s32 %v220_v34, %v218_v33 }
  0x4b   : > { %273 = vmax.xlane.f32.xlu0 %v888_v5  ;;  %277 = vmax.xlane.f32.xlu1 %v891_v6  ;;  %v242_v59 = vld [vmem:[#allocation4] sm:$0xff]  ;;  %v243_v63 = vld [vmem:[#allocation4 + $0x8] sm:$0xff] }
  0x4c   : > { %v244_v2 = vld [vmem:[#allocation4 + $0x10] sm:$0xff]  ;;  %v245_v7 = vld [vmem:[#allocation4 + $0x18] sm:$0xff] }
  0xd0   : > { %v272_v10 = vpop.xlane.xlu0 %271  ;;  %v276_v11 = vpop.xlane.xlu1 %275 }
  0xd1   : > { %v900_v12 = vmax.f32 %v895_v8, %v272_v10  ;;  %v903_v13 = vmax.f32 %v897_v9, %v276_v11 }
  0xd3   : > { %v287_v16 = vsub.f32 %v895_v8, %v900_v12  ;;  %351 = vst.msk [vmem:[#allocation2] sm:$0xff] %vm262_vm2, %v900_v12  ;;  %305 = vperm.xlu0 %598, %v900_v12   ;;  %v289_v17 = vsub.f32 %v897_v9, %v903_v13  ;;  %353 = vst.msk [vmem:[#allocation2 + $0x10] sm:$0xff] %vm262_vm2, %v903_v13 }
  0xd4   : > { %v274_v18 = vpop.xlane.xlu0 %273  ;;  %v278_v19 = vpop.xlane.xlu1 %277 }
  0xd5   : > { %v919_v20 = vmax.f32 %v905_v14, %v274_v18  ;;  %v922_v21 = vmax.f32 %v907_v15, %v278_v19  ;;  %v291_v56 = vmul.f32 1.442695, %v287_v16  ;;  %v295_v57 = vmul.f32 1.442695, %v289_v17 }
  0xd7   : > { %v288_v22 = vsub.f32 %v905_v14, %v919_v20  ;;  %352 = vst.msk [vmem:[#allocation2 + $0x8] sm:$0xff] %vm262_vm2, %v919_v20  ;;  %310 = vperm.xlu1 %599, %v919_v20   ;;  %v290_v23 = vsub.f32 %v907_v15, %v922_v21  ;;  %354 = vst.msk [vmem:[#allocation2 + $0x18] sm:$0xff] %vm262_vm2, %v922_v21  ;;  %v285_v14 = vld [vmem:[#allocation3 + $0x10] sm:$0xff] }
  0xd9   : > { %v293_v58 = vmul.f32 1.442695, %v288_v22  ;;  %v297_v60 = vmul.f32 1.442695, %v290_v23  ;;  %v286_v22 = vld [vmem:[#allocation3 + $0x18] sm:$0xff] }
  0xdb   : > { %315 = vperm.xlu1 %599, %v903_v13   ;;  %v284_v13 = vld [vmem:[#allocation3 + $0x8] sm:$0xff] }
  0xdf   : > { %320 = vperm.xlu1 %599, %v922_v21  }
  0xe3   : > { %227 = vperm.xlu1 %599, %v222_v24  }
  0xe7   : > { %230 = vperm.xlu1 %599, %v223_v25  }
  0xeb   : > { %233 = vperm.xlu1 %599, %v224_v26  }
  0xef   : > { %236 = vperm.xlu1 %599, %v225_v27  }
 0x14e   : > { %v306_v30 = vpop.permute.xlu0 %305 }
 0x14f   : > { %v323_v32 = vsub.f32 %v880_v3, %v306_v30 }
 0x151   : > { %v327_v37 = vmul.f32 1.442695, %v323_v32 }
 0x152   : > { %v311_v28 = vpop.permute.xlu1 %310 }
 0x153   : > { %v324_v35 = vsub.f32 %v888_v5, %v311_v28  ;;  %600 = vpow2.f32 %v327_v37 }
 0x155   : > { %v329_v40 = vmul.f32 1.442695, %v324_v35 }
 0x156   : > { %v316_v31 = vpop.permute.xlu1 %315 }
 0x157   : > { %v325_v38 = vsub.f32 %v883_v4, %v316_v31  ;;  %602 = vpow2.f32 %v329_v40 }
 0x159   : > { %v331_v42 = vmul.f32 1.442695, %v325_v38 }
 0x15a   : > { %v321_v36 = vpop.permute.xlu1 %320 }
 0x15b   : > { %v326_v43 = vsub.f32 %v891_v6, %v321_v36  ;;  %604 = vpow2.f32 %v331_v42 }
 0x15d   : > { %v333_v46 = vmul.f32 1.442695, %v326_v43 }
 0x15e   : > { %v228_v41 = vpop.permute.xlu1 %227 }
 0x15f   : > { %vm238_vm3 = vcmp.eq.s32.totalorder %v221_v39, %v228_v41  ;;  %606 = vpow2.f32 %v333_v46 }
 0x160   : > { %v246_v44 = vsel %vm238_vm3, %v880_v3, 0.0  ;;  %v601_v51 = vpop.eup %600  ;;  %608 = vpow2.f32 %v291_v56 }
 0x161   : > { %250 = vadd.xlane.f32.xlu1 %v246_v44  ;;  %610 = vpow2.f32 %v295_v57 }
 0x162   : > { %v231_v45 = vpop.permute.xlu1 %230  ;;  %612 = vpow2.f32 %v293_v58 }
 0x163   : > { %vm239_vm4 = vcmp.eq.s32.totalorder %v221_v39, %v231_v45  ;;  %614 = vpow2.f32 %v297_v60 }
 0x164   : > { %v247_v47 = vsel %vm239_vm4, %v888_v5, 0.0  ;;  %v603_v53 = vpop.eup %602  ;;  %v283_v5 = vld [vmem:[#allocation3] sm:$0xff] }
 0x165   : > { %252 = vadd.xlane.f32.xlu0 %v247_v47 }
 0x166   : > { %v234_v48 = vpop.permute.xlu1 %233 }
 0x167   : > { %vm240_vm5 = vcmp.eq.s32.totalorder %v221_v39, %v234_v48 }
 0x168   : > { %v248_v49 = vsel %vm240_vm5, %v883_v4, 0.0  ;;  %v605_v54 = vpop.eup %604 }
 0x169   : > { %254 = vadd.xlane.f32.xlu0 %v248_v49 }
 0x16a   : > { %v237_v50 = vpop.permute.xlu1 %236 }
 0x16b   : > { %vm241_vm6 = vcmp.eq.s32.totalorder %v221_v39, %v237_v50 }
 0x16c   : > { %v249_v52 = vsel %vm241_vm6, %v891_v6, 0.0  ;;  %v607_v55 = vpop.eup %606 }
 0x16d   : > { %256 = vadd.xlane.f32.xlu1 %v249_v52  ;;  %335 = vadd.xlane.f32.xlu0 %v601_v51  ;;  %v609_v3 = vpop.eup %608 }
 0x16e   : > { %v611_v8 = vpop.eup %610  ;;  %v299_v9 = vmul.f32 %v609_v3, %v283_v5 }
 0x16f   : > { %v613_v10 = vpop.eup %612  ;;  %v301_v18 = vmul.f32 %v611_v8, %v285_v14 }
 0x170   : > { %v300_v17 = vmul.f32 %v613_v10, %v284_v13  ;;  %v615_v19 = vpop.eup %614 }
 0x171   : > { %337 = vadd.xlane.f32.xlu1 %v603_v53  ;;  %339 = vadd.xlane.f32.xlu0 %v605_v54  ;;  %v302_v25 = vmul.f32 %v615_v19, %v286_v22 }
 0x175   : > { %341 = vadd.xlane.f32.xlu1 %v607_v55 }
 0x1ea   : > { %v251_v61 = vpop.xlane.xlu1 %250 }
 0x1eb   : > { %v258_v62 = vadd.f32 %v251_v61, %v242_v59 }
 0x1ed   : > { %263 = vst.msk [vmem:[#allocation4] sm:$0xff] %vm262_vm2, %v258_v62 }
 0x1ee   : > { %v253_v0 = vpop.xlane.xlu0 %252 }
 0x1ef   : > { %v259_v1 = vadd.f32 %v253_v0, %v243_v63 }
 0x1f1   : > { %264 = vst.msk [vmem:[#allocation4 + $0x8] sm:$0xff] %vm262_vm2, %v259_v1 }
 0x1f2   : > { %v255_v4 = vpop.xlane.xlu0 %254 }
 0x1f3   : > { %v260_v6 = vadd.f32 %v255_v4, %v244_v2 }
 0x1f5   : > { %265 = vst.msk [vmem:[#allocation4 + $0x10] sm:$0xff] %vm262_vm2, %v260_v6 }
 0x1f6   : > { %v257_v11 = vpop.xlane.xlu1 %256  ;;  %v336_v12 = vpop.xlane.xlu0 %335 }
 0x1f7   : > { %v261_v15 = vadd.f32 %v257_v11, %v245_v7  ;;  %v343_v16 = vadd.f32 %v336_v12, %v299_v9 }
 0x1f9   : > { %266 = vst.msk [vmem:[#allocation4 + $0x18] sm:$0xff] %vm262_vm2, %v261_v15  ;;  %347 = vst.msk [vmem:[#allocation3] sm:$0xff] %vm262_vm2, %v343_v16 }
 0x1fa   : > { %v338_v20 = vpop.xlane.xlu1 %337  ;;  %v340_v21 = vpop.xlane.xlu0 %339 }
 0x1fb   : > { %v344_v23 = vadd.f32 %v338_v20, %v300_v17  ;;  %v345_v24 = vadd.f32 %v340_v21, %v301_v18 }
 0x1fd   : > { %348 = vst.msk [vmem:[#allocation3 + $0x8] sm:$0xff] %vm262_vm2, %v344_v23  ;;  %349 = vst.msk [vmem:[#allocation3 + $0x10] sm:$0xff] %vm262_vm2, %v345_v24  ;;  %358 = sbr.rel (%p505_p13) target bundleno = 750 (0x2ee), region = 44 }
 0x1fe   : > { %v342_v26 = vpop.xlane.xlu1 %341 }
 0x1ff   : > { %v346_v27 = vadd.f32 %v342_v26, %v302_v25 }
 0x201   : > { %350 = vst.msk [vmem:[#allocation3 + $0x18] sm:$0xff] %vm262_vm2, %v346_v27 }
 0x202   : > { %v363_v28 = vld [vmem:[#allocation3] sm:$0xff]  ;;  %v360_v35 = vld [vmem:[#allocation2 + $0x8] sm:$0xff]  ;;  %v361_v38 = vld [vmem:[#allocation2 + $0x10] sm:$0xff]  ;;  %vm407_vm7 = vcmask 0  }
 0x203   : > { %616 = vlog2.f32 %v363_v28  ;;  %v359_v33 = vld [vmem:[#allocation2] sm:$0xff]  ;;  %v362_v42 = vld [vmem:[#allocation2 + $0x18] sm:$0xff]  ;;  %v380_v45 = vld [vmem:[#allocation4 + $0x8] sm:$0xff] }
 0x204   : > { %v364_v29 = vld [vmem:[#allocation3 + $0x8] sm:$0xff]  ;;  %v365_v30 = vld [vmem:[#allocation3 + $0x10] sm:$0xff]  ;;  %v379_v40 = vld [vmem:[#allocation4] sm:$0xff] }
 0x205   : > { %618 = vlog2.f32 %v364_v29  ;;  %v381_v48 = vld [vmem:[#allocation4 + $0x10] sm:$0xff]  ;;  %v382_v50 = vld [vmem:[#allocation4 + $0x18] sm:$0xff]  ;;  %v387_v6 = vld [vmem:[#allocation8] sm:$0x1] }
 0x206   : > { %620 = vlog2.f32 %v365_v30 }
 0x208   : > { %v366_v31 = vld [vmem:[#allocation3 + $0x18] sm:$0xff] }
 0x209   : > { %622 = vlog2.f32 %v366_v31 }
 0x210   : > { %v617_v32 = vpop.eup %616 }
 0x211   : > { %v368_v36 = vmul.f32 0.6931472, %v617_v32 }
 0x212   : > { %v619_v34 = vpop.eup %618 }
 0x213   : > { %v621_v37 = vpop.eup %620  ;;  %v370_v39 = vmul.f32 0.6931472, %v619_v34  ;;  %v375_v44 = vadd.f32 %v368_v36, %v359_v33 }
 0x214   : > { %v372_v43 = vmul.f32 0.6931472, %v621_v37 }
 0x215   : > { %v376_v47 = vadd.f32 %v370_v39, %v360_v35  ;;  %v383_v51 = vsub.f32 %v375_v44, %v379_v40 }
 0x216   : > { %v623_v41 = vpop.eup %622  ;;  %v377_v49 = vadd.f32 %v372_v43, %v361_v38 }
 0x217   : > { %v374_v46 = vmul.f32 0.6931472, %v623_v41  ;;  %v384_v53 = vsub.f32 %v376_v47, %v380_v45  ;;  %v388_v55 = vsel %vm262_vm2, %v383_v51, 0.0 }
 0x218   : > { %v385_v54 = vsub.f32 %v377_v49, %v381_v48 }
 0x219   : > { %v378_v52 = vadd.f32 %v374_v46, %v362_v42  ;;  %v389_v57 = vsel %vm262_vm2, %v384_v53, 0.0 }
 0x21a   : > { %v390_v58 = vadd.f32 %v389_v57, %v388_v55  ;;  %v391_v59 = vsel %vm262_vm2, %v385_v54, 0.0 }
 0x21b   : > { %v386_v56 = vsub.f32 %v378_v52, %v382_v50 }
 0x21c   : > { %v392_v61 = vadd.f32 %v391_v59, %v390_v58 }
 0x21d   : > { %v393_v60 = vsel %vm262_vm2, %v386_v56, 0.0 }
 0x21e   : > { %v394_v62 = vadd.f32 %v393_v60, %v392_v61 }
 0x220   : > { %395 = vadd.xlane.f32.xlu0 %v394_v62 }
 0x2a9   : > { %v396_v63 = vpop.xlane.xlu0 %395 }
 0x2aa   : > { %v397_v0 = vrot.slane %v396_v63, 4 }
 0x2ac   : > { %v398_v1 = vadd.f32 %v397_v0, %v396_v63 }
 0x2ae   : > { %v399_v2 = vrot.slane %v398_v1, 2 }
 0x2b0   : > { %v400_v3 = vadd.f32 %v399_v2, %v398_v1 }
 0x2b2   : > { %v401_v4 = vrot.slane %v400_v3, 1 }
 0x2b4   : > { %v402_v5 = vadd.f32 %v401_v4, %v400_v3 }
 0x2b6   : > { %511 = vpush %v402_v5 }
 0x2e7   : > { %s512_s12 = spop %511 }
 0x2e8   : > { %s404_s23 = smul.f32 0.015625, %s512_s12 }
 0x2ea   : > { %v405_v7 = vstv %s404_s23 }
 0x2eb   : > { %v406_v8 = vadd.f32 %v405_v7, %v387_v6 }
 0x2ed   : > { %408 = vst.msk [vmem:[#allocation8] sm:$0x1] %vm407_vm7, %v406_v8 }
 0x2ee PF: > { %p972_p0 = scmp.eq.s32.totalorder %s492_s17, 3  ;;  %s756_s24 = smov [#allocation8]  }
 0x2ef   : > { %s416_s25 = sshll.u32 %s756_s24, 4  ;;  %s417_s25 = int_to_ptr.vmem [resolvable:$true] %s416_s25 }
 0x2f0   : > { %s652_s27 = scalar_lea.vmem %s417_s25, 16  ;;  %s658_s22 = scalar_lea.vmem %s417_s25, 32 }
 0x2f1   : > { %p653_p1 = scmp.ne.s32.totalorder %s417_s25, %s652_s27  ;;  %p659_p4 = scmp.lt.s32.totalorder %s417_s25, %s417_s25 }
 0x2f2   : > { %p660_p5 = scmp.lt.s32.totalorder %s658_s22, %s652_s27 }
 0x2f3   : > { %p654_p2 = pnand %p653_p1, %p972_p0 }
 0x2f4   : > { %p661_p6 = por %p660_p5, %p659_p4 }
 0x2f5   : > { %p655_p3 = pneg %p654_p2 }
 0x2f7   : > { %p662_p8 = pnand %p661_p6, %p655_p3 }
 0x2f9   : > { %665 = shalt.err (!%p662_p8)
}
 0x2fa   : > { %516 = dma.vmem_to_hbm [thread:$0]  (%p972_p0), %s417_s25, 16, %s1013_s2, [#allocation7]  }
 0x2fb   : > { %713 = dma.done.wait (%p972_p0), [#allocation7], 16  }
 0x2fc   : > { %715 = vsyncadd (%p972_p0), [#allocation7], 4294967280 }
 0x2fd PF: > { %s16_s16 = sadd.s32 1, %s746_s16   ;;  %s1018_s9 = smov %s722_s10 }
 0x2fe   : > { %p13_p9 = scmp.ge.s32.totalorder %s16_s16, 6   ;;  %s1019_s10 = smov %s726_s11 }
 0x2ff   : > { %s1020_s11 = smov %s841_s29  ;;  %s1021_s12 = smov %s738_s14 }
 0x300   : > { %s1022_s13 = smov %s742_s15  ;;  %s1023_s14 = smov %s1026_s18 }
 0x301   : > { %s1024_s15 = smov %s1030_s19  ;;  %15 = sbr.rel (!%p13_p9) target bundleno = 6 (0x6), region = 80 }
 0x306   :  { %429 = vsyncpa [#allocation6], 1 }
 0x307   :  { %431 = vsyncpa [#allocation6 + $0x1], 1 }
 0x308   :  { %432 = vsyncpa [#allocation7], 1 }
 0x309   :  { %434 = vsyncpa [#allocation7 + $0x1], 1 }

</bundles_post_ra>
